<compile_context>
chip_gen: v7x
topology: tpu7x:2x2x1
jax: 0.10.0
libtpu: 0.0.40
codegen_flags: <defaults>
</compile_context>

<pallas_src>
import functools

import jax
import jax.numpy as jnp
from jax import lax
from jax.experimental import pallas as pl
from jax.experimental.pallas import tpu as pltpu


def _attend_flash_kernel(q_ref, k_ref, v_ref, o_ref, m_sc, l_sc, acc_sc, *, scale):
    """One (head-group, q-tile, kv-tile) step of flash attention (online softmax)."""
    kv = pl.program_id(2)

    @pl.when(kv == 0)
    def _():
        m_sc[...] = jnp.full(m_sc.shape, -jnp.inf, dtype=m_sc.dtype)
        l_sc[...] = jnp.zeros(l_sc.shape, dtype=l_sc.dtype)
        acc_sc[...] = jnp.zeros(acc_sc.shape, dtype=acc_sc.dtype)

    q = q_ref[...]            # (g, tq, d) input dtype (no f32 upcast before the MXU)
    k = k_ref[...]            # (g, tk, d)
    v = v_ref[...]            # (g, tk, d)

    # Fold the softmax scale into q: g*tq*d VPU multiplies instead of g*tq*tk on sim.
    q = (q * scale).astype(q.dtype)

    # sim = q @ k^T via last-dim contraction; no explicit transpose of k is emitted.
    s = lax.dot_general(
        q, k,
        dimension_numbers=(((2,), (2,)), ((0,), (0,))),
        preferred_element_type=jnp.float32)              # (g, tq, tk), f32

    # Online (streaming) softmax; all statistics stay in f32 (v5e has no bf16 VPU/EUP).
    m_prev = m_sc[...]
    m_new = jnp.maximum(m_prev, jnp.max(s, axis=-1, keepdims=True))
    alpha = jnp.exp(m_prev - m_new)
    p = jnp.exp(s - m_new)

    l_sc[...] = alpha * l_sc[...] + jnp.sum(p, axis=-1, keepdims=True)

    pv = lax.dot_general(
        p.astype(v.dtype), v,                            # feed MXU in v's dtype
        dimension_numbers=(((2,), (1,)), ((0,), (0,))),
        preferred_element_type=jnp.float32)              # (g, tq, d), f32
    acc_sc[...] = alpha * acc_sc[...] + pv
    m_sc[...] = m_new

    # TODO(synk): attn dropout (p=0.0 at eval) is a no-op; training-time dropout
    # would use pltpu.prng_seed / pltpu.stateful_bernoulli on `p`.

    @pl.when(kv == pl.num_programs(2) - 1)
    def _():
        inv_l = pl.reciprocal(l_sc[...], approx=True)    # EUP vrcp slot (~free)
        o_ref[...] = (acc_sc[...] * inv_l).astype(o_ref.dtype)


def _largest_divisor_leq(n, cap):
    t = max(1, min(cap, n))
    while n % t:
        t -= 1
    return t


def _choose_seq_tile(n, cap):
    """Largest divisor of n that is <= cap and is a multiple of 8 (or == n)."""
    for t in range(min(cap, n), 0, -1):
        if n % t == 0 and (t % 8 == 0 or t == n):
            return t
    return n


def attend(q, k, v, scale=None):
    """q, k, v: (b, h, n, d) arrays. Returns softmax(q k^T * scale) @ v, shape (b, h, n, d)."""
    b, h, n, d = q.shape
    eff_scale = float(d) ** -0.5 if scale is None else float(scale)

    bh = b * h
    qf = q.reshape(bh, n, d)
    kf = k.reshape(bh, n, d)
    vf = v.reshape(bh, n, d)

    # Sequence tiling (flash): caps the VMEM working set, removes the n^2 ceiling
    # (this matters most on v7x's 64 MiB VMEM).
    tq = _choose_seq_tile(n, 256)
    tk = _choose_seq_tile(n, 512)

    # Group several (b, h) slices per grid step to amortize the ~0.35 us/step
    # pipeline overhead on small-d tiles, while (a) keeping the f32 (g, tq, tk)
    # sim tile a couple of MiB at most and (b) leaving >= 2 steps on the leading
    # "parallel" axis so both v7x TensorCores get work.
    itemsize = q.dtype.itemsize
    target_g_dma = max(1, (1 << 19) // (max(tq, tk) * d * itemsize))   # ~512 KiB k/v tiles
    target_g_sim = max(1, (2 << 20) // (tq * tk * 4))                  # <=~2 MiB f32 sim tile
    g_cap = bh if bh < 2 else max(1, bh // 2)
    g = _largest_divisor_leq(bh, min(target_g_dma, target_g_sim, g_cap))

    grid = (bh // g, n // tq, n // tk)

    q_spec = pl.BlockSpec((g, tq, d), lambda bi, qi, ki: (bi, qi, 0))
    k_spec = pl.BlockSpec((g, tk, d), lambda bi, qi, ki: (bi, ki, 0))
    v_spec = pl.BlockSpec((g, tk, d), lambda bi, qi, ki: (bi, ki, 0))
    o_spec = pl.BlockSpec((g, tq, d), lambda bi, qi, ki: (bi, qi, 0))
    # TODO(synk): for small d (< 128) the output block's last dim is not lane-dense
    # (masked vst); a (b, n, h*d) output layout would fix that at the cost of
    # wrapper-side transposes of q/k/v.

    kernel = functools.partial(_attend_flash_kernel, scale=eff_scale)

    out_flat = pl.pallas_call(
        kernel,
        out_shape=jax.ShapeDtypeStruct((bh, n, d), q.dtype),
        grid_spec=pltpu.PrefetchScalarGridSpec(
            num_scalar_prefetch=0,
            grid=grid,
            in_specs=[q_spec, k_spec, v_spec],
            out_specs=o_spec,
            scratch_shapes=[
                pltpu.VMEM((g, tq, 1), jnp.float32),   # running max  m
                pltpu.VMEM((g, tq, 1), jnp.float32),   # running sum  l
                pltpu.VMEM((g, tq, d), jnp.float32),   # f32 output accumulator
            ],
        ),
        compiler_params=pltpu.CompilerParams(
            dimension_semantics=("parallel", "parallel", "arbitrary"),
        ),
    )(qf, kf, vf)

    return out_flat.reshape(b, h, n, d)


def _reference(q, k, v, scale=None):
    d = q.shape[-1]
    eff_scale = d ** -0.5 if scale is None else scale
    sim = jnp.einsum('bhid,bhjd->bhij', q, k) * eff_scale
    attn = jax.nn.softmax(sim, axis=-1)
    return jnp.einsum('bhij,bhjd->bhid', attn, v)


if __name__ == "__main__":
    key = jax.random.PRNGKey(0)
    kq, kk, kv = jax.random.split(key, 3)

    b, h, n, d = 2, 4, 8, 32
    q = jax.random.normal(kq, (b, h, n, d), dtype=jnp.float32)
    k = jax.random.normal(kk, (b, h, n, d), dtype=jnp.float32)
    v = jax.random.normal(kv, (b, h, n, d), dtype=jnp.float32)

    out = jax.block_until_ready(attend(q, k, v))
    ref = _reference(q, k, v)

    assert out.shape == (b, h, n, d)
    assert jnp.allclose(out, ref, atol=2e-3, rtol=2e-3), "mismatch vs reference"

    print("KERNEL_OK")
</pallas_src>

<mosaic_0001>
module attributes {stable_mosaic.version = 11 : i64} {
  func.func @_attend_flash_kernel(%arg0: i32, %arg1: i32, %arg2: i32, %arg3: memref<4x8x32xf32, #tpu.memory_space<vmem>>, %arg4: memref<4x8x32xf32, #tpu.memory_space<vmem>>, %arg5: memref<4x8x32xf32, #tpu.memory_space<vmem>>, %arg6: memref<4x8x32xf32, #tpu.memory_space<vmem>>, %arg7: memref<4x8x1xf32, #tpu.memory_space<vmem>>, %arg8: memref<4x8x1xf32, #tpu.memory_space<vmem>>, %arg9: memref<4x8x32xf32, #tpu.memory_space<vmem>>) attributes {dimension_semantics = [#tpu.dimension_semantics<parallel>, #tpu.dimension_semantics<parallel>, #tpu.dimension_semantics<arbitrary>], iteration_bounds = array<i64: 2, 1, 1>, scalar_prefetch = 0 : i64, scratch_operands = 3 : i64, tpu.core_type = #tpu.core_type<tc>, window_params = [{transform_indices = @transform_0, window_bounds = array<i64: 4, 8, 32>}, {transform_indices = @transform_1, window_bounds = array<i64: 4, 8, 32>}, {transform_indices = @transform_2, window_bounds = array<i64: 4, 8, 32>}, {transform_indices = @transform_3, window_bounds = array<i64: 4, 8, 32>}]} {
    %c0_i32 = arith.constant 0 : i32
    %0 = arith.cmpi eq, %arg2, %c0_i32 : i32
    %1 = arith.extui %0 : i1 to i32
    %c0_i32_0 = arith.constant 0 : i32
    %2 = arith.cmpi ne, %1, %c0_i32_0 : i32
    scf.if %2 {
      %cst_33 = arith.constant 0xFF800000 : f32
      %34 = vector.broadcast %cst_33 : f32 to vector<4x8x1xf32>
      %c0_34 = arith.constant 0 : index
      %c0_35 = arith.constant 0 : index
      %c0_36 = arith.constant 0 : index
      %35 = vector.load %arg7[%c0_34, %c0_35, %c0_36] : memref<4x8x1xf32, #tpu.memory_space<vmem>>, vector<4x8x1xf32>
      tpu.vector_store %arg7[%c0_34, %c0_35, %c0_36], %34 {strides = array<i32>} : memref<4x8x1xf32, #tpu.memory_space<vmem>>, vector<4x8x1xf32>,
      %cst_37 = arith.constant 0.000000e+00 : f32
      %36 = vector.broadcast %cst_37 : f32 to vector<4x8x1xf32>
      %c0_38 = arith.constant 0 : index
      %c0_39 = arith.constant 0 : index
      %c0_40 = arith.constant 0 : index
      %37 = vector.load %arg8[%c0_38, %c0_39, %c0_40] : memref<4x8x1xf32, #tpu.memory_space<vmem>>, vector<4x8x1xf32>
      tpu.vector_store %arg8[%c0_38, %c0_39, %c0_40], %36 {strides = array<i32>} : memref<4x8x1xf32, #tpu.memory_space<vmem>>, vector<4x8x1xf32>,
      %cst_41 = arith.constant 0.000000e+00 : f32
      %38 = vector.broadcast %cst_41 : f32 to vector<4x8x32xf32>
      %c0_42 = arith.constant 0 : index
      %c0_43 = arith.constant 0 : index
      %c0_44 = arith.constant 0 : index
      %39 = vector.load %arg9[%c0_42, %c0_43, %c0_44] : memref<4x8x32xf32, #tpu.memory_space<vmem>>, vector<4x8x32xf32>
      tpu.vector_store %arg9[%c0_42, %c0_43, %c0_44], %38 {strides = array<i32>} : memref<4x8x32xf32, #tpu.memory_space<vmem>>, vector<4x8x32xf32>,
    } else {
    }
    %c0 = arith.constant 0 : index
    %c0_1 = arith.constant 0 : index
    %c0_2 = arith.constant 0 : index
    %3 = vector.load %arg3[%c0, %c0_1, %c0_2] : memref<4x8x32xf32, #tpu.memory_space<vmem>>, vector<4x8x32xf32>
    %c0_3 = arith.constant 0 : index
    %c0_4 = arith.constant 0 : index
    %c0_5 = arith.constant 0 : index
    %4 = vector.load %arg4[%c0_3, %c0_4, %c0_5] : memref<4x8x32xf32, #tpu.memory_space<vmem>>, vector<4x8x32xf32>
    %c0_6 = arith.constant 0 : index
    %c0_7 = arith.constant 0 : index
    %c0_8 = arith.constant 0 : index
    %5 = vector.load %arg5[%c0_6, %c0_7, %c0_8] : memref<4x8x32xf32, #tpu.memory_space<vmem>>, vector<4x8x32xf32>
    %cst = arith.constant 0.176776692 : f32
    %6 = vector.broadcast %cst : f32 to vector<4x8x32xf32>
    %7 = arith.mulf %3, %6 : vector<4x8x32xf32>
    %cst_9 = arith.constant dense<0.000000e+00> : vector<4x8x8xf32>
    %8 = tpu.matmul %7, %4, %cst_9 {dimension_numbers = #tpu.dot_dimension_numbers<[2], [2], [1], [1], [0, 0, 0, 1, 1, 1], [0], [0]>} : vector<4x8x32xf32>, vector<4x8x32xf32>, vector<4x8x8xf32> -> vector<4x8x8xf32>
    %c0_10 = arith.constant 0 : index
    %c0_11 = arith.constant 0 : index
    %c0_12 = arith.constant 0 : index
    %9 = vector.load %arg7[%c0_10, %c0_11, %c0_12] : memref<4x8x1xf32, #tpu.memory_space<vmem>>, vector<4x8x1xf32>
    %cst_13 = arith.constant dense<0xFF800000> : vector<4x8xf32>
    %10 = vector.multi_reduction <maximumf>, %8, %cst_13 [2] : vector<4x8x8xf32> to vector<4x8xf32>
    %11 = vector.shape_cast %10 : vector<4x8xf32> to vector<4x8x1xf32>
    %12 = arith.maximumf %9, %11 : vector<4x8x1xf32>
    %13 = arith.subf %9, %12 : vector<4x8x1xf32>
    %14 = math.exp %13 : vector<4x8x1xf32>
    %15 = vector.broadcast %12 : vector<4x8x1xf32> to vector<4x8x8xf32>
    %16 = arith.subf %8, %15 : vector<4x8x8xf32>
    %17 = math.exp %16 : vector<4x8x8xf32>
    %c0_14 = arith.constant 0 : index
    %c0_15 = arith.constant 0 : index
    %c0_16 = arith.constant 0 : index
    %18 = vector.load %arg8[%c0_14, %c0_15, %c0_16] : memref<4x8x1xf32, #tpu.memory_space<vmem>>, vector<4x8x1xf32>
    %19 = arith.mulf %14, %18 : vector<4x8x1xf32>
    %cst_17 = arith.constant dense<0.000000e+00> : vector<4x8xf32>
    %20 = vector.multi_reduction <add>, %17, %cst_17 [2] : vector<4x8x8xf32> to vector<4x8xf32>
    %21 = vector.shape_cast %20 : vector<4x8xf32> to vector<4x8x1xf32>
    %22 = arith.addf %19, %21 : vector<4x8x1xf32>
    %c0_18 = arith.constant 0 : index
    %c0_19 = arith.constant 0 : index
    %c0_20 = arith.constant 0 : index
    %23 = vector.load %arg8[%c0_18, %c0_19, %c0_20] : memref<4x8x1xf32, #tpu.memory_space<vmem>>, vector<4x8x1xf32>
    tpu.vector_store %arg8[%c0_18, %c0_19, %c0_20], %22 {strides = array<i32>} : memref<4x8x1xf32, #tpu.memory_space<vmem>>, vector<4x8x1xf32>,
    %cst_21 = arith.constant dense<0.000000e+00> : vector<4x8x32xf32>
    %24 = tpu.matmul %17, %5, %cst_21 {dimension_numbers = #tpu.dot_dimension_numbers<[2], [1], [1], [2], [0, 0, 0, 1, 1, 2], [0], [0]>} : vector<4x8x8xf32>, vector<4x8x32xf32>, vector<4x8x32xf32> -> vector<4x8x32xf32>
    %c0_22 = arith.constant 0 : index
    %c0_23 = arith.constant 0 : index
    %c0_24 = arith.constant 0 : index
    %25 = vector.load %arg9[%c0_22, %c0_23, %c0_24] : memref<4x8x32xf32, #tpu.memory_space<vmem>>, vector<4x8x32xf32>
    %26 = vector.broadcast %14 : vector<4x8x1xf32> to vector<4x8x32xf32>
    %27 = arith.mulf %26, %25 : vector<4x8x32xf32>
    %28 = arith.addf %27, %24 : vector<4x8x32xf32>
    %c0_25 = arith.constant 0 : index
    %c0_26 = arith.constant 0 : index
    %c0_27 = arith.constant 0 : index
    %29 = vector.load %arg9[%c0_25, %c0_26, %c0_27] : memref<4x8x32xf32, #tpu.memory_space<vmem>>, vector<4x8x32xf32>
    tpu.vector_store %arg9[%c0_25, %c0_26, %c0_27], %28 {strides = array<i32>} : memref<4x8x32xf32, #tpu.memory_space<vmem>>, vector<4x8x32xf32>,
    %c0_28 = arith.constant 0 : index
    %c0_29 = arith.constant 0 : index
    %c0_30 = arith.constant 0 : index
    %30 = vector.load %arg7[%c0_28, %c0_29, %c0_30] : memref<4x8x1xf32, #tpu.memory_space<vmem>>, vector<4x8x1xf32>
    tpu.vector_store %arg7[%c0_28, %c0_29, %c0_30], %12 {strides = array<i32>} : memref<4x8x1xf32, #tpu.memory_space<vmem>>, vector<4x8x1xf32>,
    %c0_i32_31 = arith.constant 0 : i32
    %31 = arith.cmpi eq, %arg2, %c0_i32_31 : i32
    %32 = arith.extui %31 : i1 to i32
    %c0_i32_32 = arith.constant 0 : i32
    %33 = arith.cmpi ne, %32, %c0_i32_32 : i32
    scf.if %33 {
      %c0_33 = arith.constant 0 : index
      %c0_34 = arith.constant 0 : index
      %c0_35 = arith.constant 0 : index
      %34 = vector.load %arg8[%c0_33, %c0_34, %c0_35] : memref<4x8x1xf32, #tpu.memory_space<vmem>>, vector<4x8x1xf32>
      %35 = tpu.reciprocal %34 {approx = true} : vector<4x8x1xf32> -> vector<4x8x1xf32>
      %c0_36 = arith.constant 0 : index
      %c0_37 = arith.constant 0 : index
      %c0_38 = arith.constant 0 : index
      %36 = vector.load %arg9[%c0_36, %c0_37, %c0_38] : memref<4x8x32xf32, #tpu.memory_space<vmem>>, vector<4x8x32xf32>
      %37 = vector.broadcast %35 : vector<4x8x1xf32> to vector<4x8x32xf32>
      %38 = arith.mulf %36, %37 : vector<4x8x32xf32>
      %c0_39 = arith.constant 0 : index
      %c0_40 = arith.constant 0 : index
      %c0_41 = arith.constant 0 : index
      %39 = vector.load %arg6[%c0_39, %c0_40, %c0_41] : memref<4x8x32xf32, #tpu.memory_space<vmem>>, vector<4x8x32xf32>
      tpu.vector_store %arg6[%c0_39, %c0_40, %c0_41], %38 {strides = array<i32>} : memref<4x8x32xf32, #tpu.memory_space<vmem>>, vector<4x8x32xf32>,
    } else {
    }
    return
  }
  func.func @transform_0(%arg0: i32, %arg1: i32, %arg2: i32) -> (i32, i32, i32) {
    %c0_i32 = arith.constant 0 : i32
    %c0_i32_0 = arith.constant 0 : i32
    return %arg0, %arg1, %c0_i32 : i32, i32, i32
  }
  func.func @transform_1(%arg0: i32, %arg1: i32, %arg2: i32) -> (i32, i32, i32) {
    %c0_i32 = arith.constant 0 : i32
    %c0_i32_0 = arith.constant 0 : i32
    return %arg0, %arg2, %c0_i32 : i32, i32, i32
  }
  func.func @transform_2(%arg0: i32, %arg1: i32, %arg2: i32) -> (i32, i32, i32) {
    %c0_i32 = arith.constant 0 : i32
    %c0_i32_0 = arith.constant 0 : i32
    return %arg0, %arg2, %c0_i32 : i32, i32, i32
  }
  func.func @transform_3(%arg0: i32, %arg1: i32, %arg2: i32) -> (i32, i32, i32) {
    %c0_i32 = arith.constant 0 : i32
    %c0_i32_0 = arith.constant 0 : i32
    return %arg0, %arg1, %c0_i32 : i32, i32, i32
  }
}

</mosaic_0001>

<bundles_post_ra>
// kernel: tpu_custom_call.1
= control target key start
LH: loop header
LB: loop body
LE: loop exit
PB: predicated region body
PF: predicated region fallthrough
CT: control target
= control target key end

     0   :  { %s2063_s0 = inlined_call_operand.hbm [shape: f32[8,8,32], index: 0, kind: input, shape index: {}]   ;;  %s2064_s1 = inlined_call_operand.hbm [shape: f32[8,8,32], index: 1, kind: input, shape index: {}]   ;;  %s2065_s2 = inlined_call_operand.hbm [shape: f32[8,8,32], index: 2, kind: input, shape index: {}]   ;;  %s2066_s3 = inlined_call_operand.hbm [shape: f32[8,8,32], index: 3, kind: output, shape index: {}]  }
   0x1   :  { %2076 = sst [smem:[#allocation18_spill]] %s2064_s1 }
   0x2   :  { %8 = vsyncpa [#allocation6], 0 }
   0x3   :  { %10 = vsyncpa [#allocation6 + $0x1], 0 }
   0x4   :  { %11 = vsyncpa [#allocation9], 0 }
   0x5   :  { %13 = vsyncpa [#allocation9 + $0x1], 0 }
   0x6   :  { %14 = vsyncpa [#allocation7], 0 }
   0x7   :  { %16 = vsyncpa [#allocation7 + $0x1], 0  ;;  %s1669_s12 = smov 0   ;;  %s1671_s13 = smov 0  }
   0x8   :  { %s1673_s14 = smov 0   ;;  %s1675_s15 = smov 0  }
   0x9   :  { %s1677_s16 = smov 0   ;;  %s1679_s17 = smov 0  }
   0xa LB: > { %2077 = sst [smem:[#allocation15_spill]] %s1631_s16  ;;  %s1700_s18 = sadd.s32 4294967295, %s1635_s17   ;;  %s1635_s17 = sphi %s1679_s17, %s22_s17   ;;  %s1631_s16 = sphi %s1677_s16, %s2100_s16   ;;  %s1627_s15 = sphi %s1675_s15, %s2099_s15   ;;  %s1623_s14 = sphi %s1673_s14, %s2103_s14   ;;  %s1619_s13 = sphi %s1671_s13, %s2102_s13   ;;  %s1615_s12 = sphi %s1669_s12, %s2101_s12  }
   0xb   : > { %s1259_s19 = sadd.s32 4294967294, %s1635_s17   ;;  %s41_s20 = sadd.s32 1, %s1631_s16 }
   0xc   : > { %s50_s21 = sadd.s32 1, %s1623_s14  ;;  %p43_p0 = scmp.ge.s32.totalorder %s41_s20, 2 }
   0xd   : > { %p57_p1 = scmp.ne.s32.totalorder %s1623_s14, %s1619_s13  ;;  %p58_p2 = scmp.eq.s32.totalorder %s1635_s17, 0 }
   0xe   : > { %p63_p3 = scmp.ne.s32.totalorder %s1619_s13, %s1615_s12  ;;  %s2105_s20 = smov (%p43_p0, %s41_s20), 0 }
   0xf   : > { %2078 = sst [smem:[#allocation16_spill]] %s2105_s20  ;;  %p1712_p4 = por %p58_p2, %p57_p1 }
  0x10   : > { %p64_p5 = scmp.eq.s32.totalorder %s1700_s18, 0  ;;  %s45_s23 = ssub.s32 %s1631_s16, %s2105_s20 }
  0x11   : > { %p145_p6 = scmp.eq.s32.totalorder %s1700_s18, 1  ;;  %p48_p7 = scmp.eq.s32.totalorder %s45_s23, 0 }
  0x12   : > { %p1720_p8 = por %p64_p5, %p63_p3  ;;  %p151_p10 = scmp.eq.s32.totalorder %s1259_s19, 1 }
  0x13   : > { %p1724_p9 = por %p145_p6, %p57_p1  ;;  %p1375_p13 = scmp.lt.s32.totalorder %s1635_s17, 2 }
  0x14   : > { %s2080_s24 = scalar_select %p1720_p8, 1, 0 }
  0x15   : > { %s2081_s25 = scalar_select %p1724_p9, 1, 0 }
  0x16   : > { %s1729_s26 = scalar_select %p48_p7, %s1623_s14, %s50_s21  }
  0x17   : > { %p1731_p11 = por %p151_p10, %p63_p3  ;;  %s2069_s28 = sand.u32 1, %s1623_s14  }
  0x18   : > { %2082 = sst [smem:[#allocation17_spill]] %s1729_s26  ;;  %s1740_s29 = sshll.u32 %s2069_s28, 5 }
  0x19   : > { %s2083_s27 = scalar_select %p1731_p11, 1, 0 }
  0x1a   : > { %s1743_s30 = sshll.u32 %s1631_s16, 9  ;;  %p1747_p0 = pnand %p1375_p13, %p1712_p4 }
  0x1b   : > { %s193_s5 = sand.u32 1, %s1635_s17   ;;  %s2085_s1 = sld [smem:[#allocation18_spill]] }
  0x1c   : > { %s197_s9 = scalar_lea.vmem [#allocation8], %s1740_s29  ;;  %s1763_s11 = scalar_lea.sflag [#allocation9], %s193_s5 }
  0x1d   : > { %s205_s10 = sshll.u32 %s197_s9, 4  ;;  %p1769_p4 = pneg %p1747_p0  ;;  %s1760_s10 = int_to_ptr.vmem [resolvable:$true] %s205_s10 }
  0x21   : > { %s1756_s8 = scalar_lea.hbm %s2085_s1, %s1743_s30  ;;  %s1464_s6 = scalar_lea.hbm %s2085_s1, 1024 }
  0x22   : > { %s1459_s19 = scalar_lea.hbm %s1756_s8, 512  ;;  %p1465_p7 = scmp.lt.u32.totalorder %s1756_s8, %s2085_s1 }
  0x23   : > { %p1460_p3 = scmp.ne.s32.totalorder %s1756_s8, %s1459_s19  ;;  %p1466_p10 = scmp.lt.u32.totalorder %s1464_s6, %s1459_s19 }
  0x24   : > { %p1468_p12 = scmp.lt.u32.totalorder %s1459_s19, %s1756_s8 }
  0x25   : > { %p1462_p5 = pnand %p1769_p4, %p1460_p3  ;;  %p1467_p13 = por %p1466_p10, %p1465_p7 }
  0x27   : > { %p1463_p6 = pneg %p1462_p5  ;;  %p1469_p1 = por %p1468_p12, %p1467_p13 }
  0x29   : > { %p1470_p2 = pnand %p1469_p1, %p1463_p6 }
  0x2b   : > { %1473 = shalt.err (!%p1470_p2)
}
  0x2c   : > { %s1474_s5 = scalar_lea.vmem %s1760_s10, 512  ;;  %s1637_s22 = smov [#allocation8]  }
  0x2d   : > { %p1475_p3 = scmp.ne.s32.totalorder %s1760_s10, %s1474_s5  ;;  %s1479_s23 = sshll.u32 %s1637_s22, 4  ;;  %s1480_s23 = int_to_ptr.vmem [resolvable:$false] %s1479_s23 }
  0x2e   : > { %s1481_s7 = scalar_lea.vmem %s1480_s23, 1024  ;;  %p1482_p9 = scmp.lt.s32.totalorder %s1760_s10, %s1480_s23 }
  0x2f   : > { %p1477_p5 = pnand %p1475_p3, %p1769_p4  ;;  %p1483_p8 = scmp.lt.s32.totalorder %s1481_s7, %s1474_s5 }
  0x31   : > { %p1478_p11 = pneg %p1477_p5  ;;  %p1484_p7 = por %p1483_p8, %p1482_p9 }
  0x33   : > { %p1485_p10 = pnand %p1484_p7, %p1478_p11 }
  0x35   : > { %1488 = shalt.err (!%p1485_p10)
}
  0x36   : > { %s2070_s19 = smov 128   ;;  %s2072_s6 = smov 8  }
  0x37   : > { %1367 = dma.hbm_to_vmem [thread:$0]  (!%p1747_p0), %s1756_s8, 512, %s1760_s10, %s1763_s11, %s2070_s19, %s2070_s19, %s2072_s6  }
  0x38   : > { %p2087_p8 = scmp.lt.s32.totalorder %s1635_s17, 3  ;;  %p2088_p9 = scmp.ge.s32.totalorder %s1635_s17, 1 }
  0x39   : > { %s1808_s23 = scalar_lea.hbm %s2063_s0, %s1743_s30  ;;  %s175_s7 = scalar_lea.vmem [#allocation5], %s1740_s29 }
  0x3a   : > { %p1800_p11 = pnand %p2088_p9, %p2087_p8  ;;  %s183_s28 = sshll.u32 %s175_s7, 4  ;;  %s1811_s28 = int_to_ptr.vmem [resolvable:$true] %s183_s28 }
  0x3b   : > { %s1817_s19 = scalar_lea.hbm %s2065_s2, %s1743_s30  ;;  %s2090_s6 = sand.u32 1, %s1623_s14  }
  0x3c   : > { %s2089_s9 = scalar_select %p1800_p11, 1, 0 }
  0x3d   : > { %s1821_s1 = scalar_lea.sflag [#allocation6], %s2090_s6  ;;  %s1489_s20 = scalar_lea.hbm %s1808_s23, 512 }
  0x3e   : > { %p1490_p12 = scmp.ne.s32.totalorder %s1808_s23, %s1489_s20  ;;  %s1494_s16 = scalar_lea.hbm %s2063_s0, 1024 }
  0x3f   : > { %p1495_p6 = scmp.lt.u32.totalorder %s1808_s23, %s2063_s0  ;;  %p1496_p13 = scmp.lt.u32.totalorder %s1494_s16, %s1489_s20 }
  0x40   : > { %p1492_p1 = pnand %p1490_p12, %p1769_p4  ;;  %p1498_p5 = scmp.lt.u32.totalorder %s1489_s20, %s1808_s23 }
  0x41   : > { %p1497_p3 = por %p1496_p13, %p1495_p6 }
  0x42   : > { %p1493_p2 = pneg %p1492_p1 }
  0x43   : > { %p1499_p7 = por %p1498_p5, %p1497_p3 }
  0x45   : > { %p1500_p10 = pnand %p1499_p7, %p1493_p2 }
  0x47   : > { %1503 = shalt.err (!%p1500_p10)
}
  0x48   : > { %s1504_s30 = scalar_lea.vmem %s1811_s28, 512  ;;  %s1640_s6 = smov [#allocation5]  }
  0x49   : > { %p1505_p8 = scmp.ne.s32.totalorder %s1811_s28, %s1504_s30  ;;  %s1509_s8 = sshll.u32 %s1640_s6, 4  ;;  %s1510_s8 = int_to_ptr.vmem [resolvable:$false] %s1509_s8 }
  0x4a   : > { %s1511_s26 = scalar_lea.vmem %s1510_s8, 1024  ;;  %p1512_p1 = scmp.lt.s32.totalorder %s1811_s28, %s1510_s8 }
  0x4b   : > { %p1507_p9 = pnand %p1505_p8, %p1769_p4  ;;  %p1513_p11 = scmp.lt.s32.totalorder %s1511_s26, %s1504_s30 }
  0x4d   : > { %p1508_p12 = pneg %p1507_p9  ;;  %p1514_p6 = por %p1513_p11, %p1512_p1 }
  0x4f   : > { %p1515_p13 = pnand %p1514_p6, %p1508_p12 }
  0x51   : > { %1518 = shalt.err (!%p1515_p13)
}
  0x52   : > { %s2091_s16 = smov 8   ;;  %s2092_s20 = smov 128  }
  0x53   : > { %1364 = dma.hbm_to_vmem [thread:$0]  (!%p1747_p0), %s1808_s23, 512, %s1811_s28, %s1821_s1, %s2092_s20, %s2092_s20, %s2091_s16  }
  0x54   : > { %s219_s10 = scalar_lea.vmem [#allocation10], %s1740_s29  ;;  %s1519_s22 = scalar_lea.hbm %s1817_s19, 512 }
  0x55   : > { %s227_s5 = sshll.u32 %s219_s10, 4  ;;  %p1520_p11 = scmp.ne.s32.totalorder %s1817_s19, %s1519_s22  ;;  %s1849_s5 = int_to_ptr.vmem [resolvable:$true] %s227_s5 }
  0x56   : > { %s1524_s6 = scalar_lea.hbm %s2065_s2, 1024  ;;  %p1525_p5 = scmp.lt.u32.totalorder %s1817_s19, %s2065_s2 }
  0x57   : > { %p1522_p2 = pnand %p1520_p11, %p1769_p4  ;;  %p1526_p7 = scmp.lt.u32.totalorder %s1524_s6, %s1519_s22 }
  0x58   : > { %p1528_p8 = scmp.lt.u32.totalorder %s1519_s22, %s1817_s19 }
  0x59   : > { %p1523_p3 = pneg %p1522_p2  ;;  %p1527_p10 = por %p1526_p7, %p1525_p5 }
  0x5b   : > { %p1529_p9 = por %p1528_p8, %p1527_p10 }
  0x5d   : > { %p1530_p12 = pnand %p1529_p9, %p1523_p3 }
  0x5f   : > { %1533 = shalt.err (!%p1530_p12)
}
  0x60   : > { %s1534_s1 = scalar_lea.vmem %s1849_s5, 512  ;;  %s1641_s28 = smov [#allocation10]  }
  0x61   : > { %p1535_p1 = scmp.ne.s32.totalorder %s1849_s5, %s1534_s1  ;;  %s1539_s29 = sshll.u32 %s1641_s28, 4  ;;  %s1540_s29 = int_to_ptr.vmem [resolvable:$false] %s1539_s29 }
  0x62   : > { %s1541_s23 = scalar_lea.vmem %s1540_s29, 1024  ;;  %p1542_p11 = scmp.lt.s32.totalorder %s1849_s5, %s1540_s29 }
  0x63   : > { %p1537_p6 = pnand %p1535_p1, %p1769_p4  ;;  %p1543_p2 = scmp.lt.s32.totalorder %s1541_s23, %s1534_s1 }
  0x65   : > { %p1538_p13 = pneg %p1537_p6  ;;  %p1544_p5 = por %p1543_p2, %p1542_p11 }
  0x67   : > { %p1545_p7 = pnand %p1544_p5, %p1538_p13 }
  0x69   : > { %1548 = shalt.err (!%p1545_p7)
}
  0x6a   : > { %1370 = dma.hbm_to_vmem [thread:$0]  (!%p1747_p0), %s1817_s19, 512, %s1849_s5, %s1763_s11, %s2092_s20, %s2092_s20, %s2091_s16  }
  0x6b   : > { %p2093_p4 = scmp.ne.s32.totalorder %s2089_s9, 0 }
  0x6c   : > { %s1879_s21 = sand.u32 (!%p2093_p4), 1, %s1619_s13   ;;  %p2094_p3 = scmp.ne.s32.totalorder (!%p2093_p4), %s2080_s24, 0 }
  0x6d   : > { %239 = sbr.rel (%p2093_p4) target bundleno = 947 (0x3b3), region = 32  ;;  %s1882_s10 = sshll.u32 (!%p2093_p4), %s1879_s21, 5 }
  0x6e   : > { %s242_s4 = scalar_lea.sflag (!%p2093_p4), [#allocation6], %s1879_s21  ;;  %s1886_s22 = scalar_lea.vmem (!%p2093_p4), [#allocation5], %s1882_s10 }
  0x74   : > { %1602 = dma.done.wait (%p2094_p3), %s242_s4, 512  }
  0x75   : > { %1604 = vsyncadd (%p2094_p3), %s242_s4, 4294966784  ;;  %s250_s11 = sand.u32 1, %s1700_s18   ;;  %s254_s9 = scalar_lea.vmem [#allocation8], %s1882_s10 }
  0x76   : > { %s251_s19 = scalar_lea.sflag [#allocation9], %s250_s11 }
  0x77   : > { %1606 = dma.done.wait (%p2094_p3), %s251_s19, 1024  }
  0x78   : > { %1608 = vsyncadd (%p2094_p3), %s251_s19, 4294966272  ;;  %vm313_vm0 = vcmask 261120   ;;  %v1642_v0 = vmov 0.0   ;;  %vm1643_vm1 = vmmov 0   ;;  %v322_v1 = vld [vmem:[%s254_s9] sm:$0xff]  ;;  %v323_v3 = vld [vmem:[%s254_s9 + $0x8] sm:$0xff] }
  0x79   : > { %1313 = vmatprep.subr.mxu0 %v1642_v0  ;;  %314 = vst.msk [vmem:[#allocation4] sm:$0xff] %vm313_vm0, %v1642_v0  ;;  %315 = vst.msk [vmem:[#allocation4 + $0x8] sm:$0xff] %vm313_vm0, %v1642_v0  ;;  %1315 = vmatprep.mubr.msk.f32.mxu0 %vm1643_vm1, %v1642_v0  ;;  %v318_v2 = vld [vmem:[%s1886_s22] sm:$0xff]  ;;  %v319_v5 = vld [vmem:[%s1886_s22 + $0x8] sm:$0xff]  ;;  %vm304_vm2 = vcmask 7168   ;;  %v1644_v13 = vmov -inf  }
  0x7a   : > { %316 = vst.msk [vmem:[#allocation4 + $0x10] sm:$0xff] %vm313_vm0, %v1642_v0  ;;  %317 = vst.msk [vmem:[#allocation4 + $0x18] sm:$0xff] %vm313_vm0, %v1642_v0  ;;  %1318 = vmatprep.subr.mxu1 %v1642_v0  ;;  %1320 = vmatprep.mubr.msk.f32.mxu1 %vm1643_vm1, %v1642_v0  ;;  %v330_v4 = vmul.f32 0.17677669, %v318_v2  ;;  %v320_v6 = vld [vmem:[%s1886_s22 + $0x10] sm:$0xff]  ;;  %v321_v9 = vld [vmem:[%s1886_s22 + $0x18] sm:$0xff] }
  0x7b   : > { %1314 = vmatpush3.xpose.msk.msra.mxu0 %vm313_vm0, %v322_v1  ;;  %1319 = vmatpush3.xpose.msk.msra.mxu1 %vm313_vm0, %v323_v3  ;;  %v331_v7 = vmul.f32 0.17677669, %v319_v5  ;;  %v324_v8 = vld [vmem:[%s254_s9 + $0x10] sm:$0xff]  ;;  %v325_v10 = vld [vmem:[%s254_s9 + $0x18] sm:$0xff]  ;;  %v332_v11 = vmul.f32 0.17677669, %v320_v6 }
  0x7c   : > { %1323 = vmatprep.subr.mxu0 %v1642_v0  ;;  %1328 = vmatprep.subr.mxu1 %v1642_v0  ;;  %v333_v12 = vmul.f32 0.17677669, %v321_v9  ;;  %305 = vst.msk [vmem:[#allocation2] sm:$0xff] %vm304_vm2, %v1644_v13  ;;  %306 = vst.msk [vmem:[#allocation2 + $0x8] sm:$0xff] %vm304_vm2, %v1644_v13  ;;  %vm643_vm3 = vcmask 64512   ;;  %v1645_v26 = vmov 0  }
  0x7d   : > { %307 = vst.msk [vmem:[#allocation2 + $0x10] sm:$0xff] %vm304_vm2, %v1644_v13  ;;  %308 = vst.msk [vmem:[#allocation2 + $0x18] sm:$0xff] %vm304_vm2, %v1644_v13  ;;  %1433 = vset.pattern.permute.xlu0 %v1645_v26  ;;  %1434 = vset.pattern.permute.xlu1 %v1645_v26  ;;  %s263_s18 = scalar_lea.vmem [#allocation10], %s1882_s10  ;;  %s295_s24 = scalar_lea.vmem [#allocation11], %s1882_s10 }
  0x7e   : > { %1316 = vmatmul.mubr.msk.f32.vlgmr.msra.gmra.mrb[0].mxu0 %vm313_vm0, %v330_v4  ;;  %1321 = vmatmul.mubr.msk.f32.vlgmr.msra.gmra.mrb[0].mxu1 %vm313_vm0, %v331_v7  ;;  %309 = vst.msk [vmem:[#allocation3] sm:$0xff] %vm304_vm2, %v1642_v0  ;;  %310 = vst.msk [vmem:[#allocation3 + $0x8] sm:$0xff] %vm304_vm2, %v1642_v0  ;;  %v326_v43 = vld [vmem:[%s263_s18] sm:$0xff]  ;;  %v327_v44 = vld [vmem:[%s263_s18 + $0x8] sm:$0xff]  ;;  %s1123_s16 = sshll.u32 %s295_s24, 4  ;;  %s1296_s20 = sshll.u32 %s1627_s15, 9  ;;  %s2007_s16 = int_to_ptr.vmem [resolvable:$true] %s1123_s16 }
  0x7f   : > { %1324 = vmatpush3.xpose.msk.msra.mxu0 %vm313_vm0, %v324_v8  ;;  %1325 = vmatprep.mubr.msk.f32.mxu0 %vm1643_vm1, %v1642_v0  ;;  %311 = vst.msk [vmem:[#allocation3 + $0x10] sm:$0xff] %vm304_vm2, %v1642_v0  ;;  %312 = vst.msk [vmem:[#allocation3 + $0x18] sm:$0xff] %vm304_vm2, %v1642_v0  ;;  %v328_v56 = vld [vmem:[%s263_s18 + $0x10] sm:$0xff]  ;;  %v329_v60 = vld [vmem:[%s263_s18 + $0x18] sm:$0xff]  ;;  %s2013_s30 = scalar_lea.hbm %s2066_s3, %s1296_s20  ;;  %s1109_s6 = scalar_lea.sflag [#allocation7], %s1879_s21 }
  0x80   : > { %1329 = vmatpush3.xpose.msk.msra.mxu1 %vm313_vm0, %v325_v10  ;;  %1330 = vmatprep.mubr.msk.f32.mxu1 %vm1643_vm1, %v1642_v0  ;;  %s1549_s8 = scalar_lea.vmem %s2007_s16, 512  ;;  %p2095_p10 = scmp.ne.s32.totalorder %s2081_s25, 0 }
  0x81   : > { %1333 = vmatprep.subr.mxu0 %v1642_v0  ;;  %1338 = vmatprep.subr.mxu1 %v1642_v0  ;;  %p1550_p0 = scmp.ne.s32.totalorder %s2007_s16, %s1549_s8  ;;  %s1646_s15 = smov [#allocation11]  }
  0x82   : > { %1326 = vmatmul.mubr.msk.f32.vlgmr.msra.gmra.mrb[2].mxu0 %vm313_vm0, %v332_v11  ;;  %s1553_s26 = sshll.u32 %s1646_s15, 4  ;;  %s1554_s26 = int_to_ptr.vmem [resolvable:$false] %s1553_s26 }
  0x83   : > { %1331 = vmatmul.mubr.msk.f32.vlgmr.msra.gmra.mrb[2].mxu1 %vm313_vm0, %v333_v12  ;;  %1335 = vmatprep.mubr.msk.f32.mxu0 %vm1643_vm1, %v1642_v0  ;;  %v1952_v27 = vld [vmem:[#allocation2] sm:$0xff]  ;;  %v1957_v30 = vld [vmem:[#allocation2 + $0x8] sm:$0xff]  ;;  %p1551_p8 = pnand %p1550_p0, %p2095_p10  ;;  %s1555_s1 = scalar_lea.vmem %s1554_s26, 1024 }
  0x84   : > { %1340 = vmatprep.mubr.msk.f32.mxu1 %vm1643_vm1, %v1642_v0  ;;  %v1959_v31 = vld [vmem:[#allocation2 + $0x10] sm:$0xff]  ;;  %v1968_v37 = vld [vmem:[#allocation2 + $0x18] sm:$0xff]  ;;  %1334 = vmatpush3.msra.mxu0 %v326_v43  ;;  %p1556_p12 = scmp.lt.s32.totalorder %s2007_s16, %s1554_s26  ;;  %p1557_p1 = scmp.lt.s32.totalorder %s1555_s1, %s1549_s8 }
  0x85   : > { %1343 = vmatprep.subr.mxu0 %v1642_v0  ;;  %1339 = vmatpush3.msra.mxu1 %v327_v44  ;;  %v704_v11 = vld [vmem:[#allocation3] sm:$0xff]  ;;  %p1552_p9 = pneg %p1551_p8 }
  0x86   : > { %1348 = vmatprep.subr.mxu1 %v1642_v0  ;;  %p1558_p6 = por %p1557_p1, %p1556_p12 }
  0x88   : > { %p1559_p13 = pnand %p1558_p6, %p1552_p9 }
 0x151   : > { %v407_v14 = vpop.f32.mrb[0].mxu0  ;;  %v483_v15 = vpop.f32.mrb[0].mxu1 }
 0x152   : > { %v1317_v16 = vpop.f32.mrb[1].mxu0  ;;  %v644_v17 = vsel %vm643_vm3, %v407_v14, -inf  ;;  %v1322_v18 = vpop.f32.mrb[1].mxu1  ;;  %v647_v19 = vsel %vm643_vm3, %v483_v15, -inf }
 0x153   : > { %645 = vmax.xlane.f32.xlu0 %v644_v17  ;;  %v706_v18 = vld [vmem:[#allocation3 + $0x10] sm:$0xff] }
 0x155   : > { %v559_v20 = vpop.f32.mrb[2].mxu0 }
 0x156   : > { %v1327_v21 = vpop.f32.mrb[3].mxu0  ;;  %v650_v22 = vsel %vm643_vm3, %v559_v20, -inf  ;;  %v635_v23 = vpop.f32.mrb[2].mxu1 }
 0x157   : > { %648 = vmax.xlane.f32.xlu0 %v647_v19  ;;  %651 = vmax.xlane.f32.xlu1 %v650_v22  ;;  %v1332_v24 = vpop.f32.mrb[3].mxu1  ;;  %v653_v25 = vsel %vm643_vm3, %v635_v23, -inf  ;;  %v707_v22 = vld [vmem:[#allocation3 + $0x18] sm:$0xff] }
 0x15b   : > { %654 = vmax.xlane.f32.xlu1 %v653_v25 }
 0x1e0   : > { %v646_v28 = vpop.xlane.xlu0 %645 }
 0x1e1   : > { %v1955_v29 = vmax.f32 %v1952_v27, %v646_v28 }
 0x1e3   : > { %v660_v32 = vsub.f32 %v1952_v27, %v1955_v29  ;;  %1061 = vst.msk [vmem:[#allocation2] sm:$0xff] %vm304_vm2, %v1955_v29  ;;  %674 = vperm.xlu0 %1433, %v1955_v29  }
 0x1e4   : > { %v649_v33 = vpop.xlane.xlu0 %648  ;;  %v652_v34 = vpop.xlane.xlu1 %651 }
 0x1e5   : > { %v657_v35 = vmax.f32 %v1957_v30, %v649_v33  ;;  %v658_v36 = vmax.f32 %v1959_v31, %v652_v34  ;;  %v664_v5 = vmul.f32 1.442695, %v660_v32 }
 0x1e7   : > { %v661_v38 = vsub.f32 %v1957_v30, %v657_v35  ;;  %1062 = vst.msk [vmem:[#allocation2 + $0x8] sm:$0xff] %vm304_vm2, %v657_v35  ;;  %679 = vperm.xlu1 %1434, %v657_v35   ;;  %v662_v39 = vsub.f32 %v1959_v31, %v658_v36  ;;  %1063 = vst.msk [vmem:[#allocation2 + $0x10] sm:$0xff] %vm304_vm2, %v658_v36  ;;  %v1025_v35 = vld [vmem:[#allocation4] sm:$0xff] }
 0x1e8   : > { %v655_v40 = vpop.xlane.xlu1 %654 }
 0x1e9   : > { %v659_v41 = vmax.f32 %v1968_v37, %v655_v40  ;;  %v666_v3 = vmul.f32 1.442695, %v661_v38  ;;  %v1026_v38 = vld [vmem:[#allocation4 + $0x8] sm:$0xff] }
 0x1eb   : > { %684 = vperm.xlu1 %1434, %v658_v36   ;;  %v663_v42 = vsub.f32 %v1968_v37, %v659_v41  ;;  %1064 = vst.msk [vmem:[#allocation2 + $0x18] sm:$0xff] %vm304_vm2, %v659_v41 }
 0x1ed   : > { %v670_v6 = vmul.f32 1.442695, %v663_v42 }
 0x1ef   : > { %689 = vperm.xlu1 %1434, %v659_v41  }
 0x262   : > { %v675_v45 = vpop.permute.xlu0 %674 }
 0x263   : > { %v692_v46 = vsub.f32 %v407_v14, %v675_v45  ;;  %v705_v14 = vld [vmem:[#allocation3 + $0x8] sm:$0xff]  ;;  %v1027_v45 = vld [vmem:[#allocation4 + $0x10] sm:$0xff] }
 0x265   : > { %v696_v47 = vmul.f32 1.442695, %v692_v46 }
 0x266   : > { %v680_v48 = vpop.permute.xlu1 %679 }
 0x267   : > { %1435 = vpow2.f32 %v696_v47  ;;  %v693_v49 = vsub.f32 %v483_v15, %v680_v48 }
 0x269   : > { %v698_v50 = vmul.f32 1.442695, %v693_v49 }
 0x26a   : > { %v685_v51 = vpop.permute.xlu1 %684 }
 0x26b   : > { %1437 = vpow2.f32 %v698_v50  ;;  %v694_v52 = vsub.f32 %v559_v20, %v685_v51  ;;  %v1028_v50 = vld [vmem:[#allocation4 + $0x18] sm:$0xff] }
 0x26d   : > { %v700_v53 = vmul.f32 1.442695, %v694_v52 }
 0x26e   : > { %v690_v54 = vpop.permute.xlu1 %689 }
 0x26f   : > { %1439 = vpow2.f32 %v700_v53  ;;  %v695_v55 = vsub.f32 %v635_v23, %v690_v54 }
 0x271   : > { %v1436_v57 = vpop.eup %1435  ;;  %v702_v58 = vmul.f32 1.442695, %v695_v55 }
 0x272   : > { %1336 = vmatmul.mubr.msk.f32.vlgmr.msra.gmra.mrb[4].mxu0 %vm643_vm3, %v1436_v57  ;;  %v712_v59 = vsel %vm643_vm3, %v1436_v57, 0.0 }
 0x273   : > { %1441 = vpow2.f32 %v702_v58  ;;  %713 = vadd.xlane.f32.xlu1 %v712_v59  ;;  %1344 = vmatpush3.msra.mxu0 %v328_v56 }
 0x274   : > { %1345 = vmatprep.mubr.msk.f32.mxu0 %vm1643_vm1, %v1642_v0  ;;  %1443 = vpow2.f32 %v666_v3 }
 0x275   : > { %v1438_v61 = vpop.eup %1437  ;;  %1445 = vpow2.f32 %v664_v5 }
 0x276   : > { %1341 = vmatmul.mubr.msk.f32.vlgmr.msra.gmra.mrb[4].mxu1 %vm643_vm3, %v1438_v61  ;;  %v715_v62 = vsel %vm643_vm3, %v1438_v61, 0.0 }
 0x277   : > { %716 = vadd.xlane.f32.xlu0 %v715_v62  ;;  %1349 = vmatpush3.msra.mxu1 %v329_v60 }
 0x278   : > { %1350 = vmatprep.mubr.msk.f32.mxu1 %vm1643_vm1, %v1642_v0  ;;  %v668_v0 = vmul.f32 1.442695, %v662_v39 }
 0x279   : > { %v1440_v63 = vpop.eup %1439 }
 0x27a   : > { %1346 = vmatmul.mubr.msk.f32.vlgmr.msra.gmra.mrb[6].mxu0 %vm643_vm3, %v1440_v63  ;;  %v718_v1 = vsel %vm643_vm3, %v1440_v63, 0.0  ;;  %1447 = vpow2.f32 %v668_v0 }
 0x27b   : > { %719 = vadd.xlane.f32.xlu1 %v718_v1  ;;  %1449 = vpow2.f32 %v670_v6 }
 0x27d   : > { %v1442_v2 = vpop.eup %1441 }
 0x27e   : > { %1351 = vmatmul.mubr.msk.f32.vlgmr.msra.gmra.mrb[6].mxu1 %vm643_vm3, %v1442_v2  ;;  %v721_v4 = vsel %vm643_vm3, %v1442_v2, 0.0  ;;  %v1444_v7 = vpop.eup %1443 }
 0x27f   : > { %722 = vadd.xlane.f32.xlu1 %v721_v4  ;;  %v1446_v8 = vpop.eup %1445  ;;  %v709_v16 = vmul.f32 %v1444_v7, %v705_v14 }
 0x280   : > { %v708_v12 = vmul.f32 %v1446_v8, %v704_v11 }
 0x284   : > { %v1448_v9 = vpop.eup %1447 }
 0x285   : > { %v1450_v10 = vpop.eup %1449  ;;  %v710_v20 = vmul.f32 %v1448_v9, %v706_v18 }
 0x286   : > { %v711_v25 = vmul.f32 %v1450_v10, %v707_v22 }
 0x28d   : > { %1036 = vperm.xlu0 %1433, %v1444_v7  }
 0x290   : > { %1031 = vperm.xlu1 %1434, %v1446_v8  }
 0x294   : > { %1041 = vperm.xlu1 %1434, %v1448_v9  }
 0x298   : > { %1046 = vperm.xlu1 %1434, %v1450_v10  }
 0x300   : > { %v714_v13 = vpop.xlane.xlu1 %713 }
 0x301   : > { %v724_v15 = vadd.f32 %v714_v13, %v708_v12 }
 0x303   : > { %729 = vst.msk [vmem:[#allocation3] sm:$0xff] %vm304_vm2, %v724_v15 }
 0x304   : > { %v717_v17 = vpop.xlane.xlu0 %716 }
 0x305   : > { %v725_v19 = vadd.f32 %v717_v17, %v709_v16 }
 0x307   : > { %730 = vst.msk [vmem:[#allocation3 + $0x8] sm:$0xff] %vm304_vm2, %v725_v19 }
 0x308   : > { %v720_v21 = vpop.xlane.xlu1 %719 }
 0x309   : > { %v726_v23 = vadd.f32 %v720_v21, %v710_v20 }
 0x30a   : > { %v1068_v24 = vld [vmem:[#allocation3] sm:$0xff] }
 0x30b   : > { %731 = vst.msk [vmem:[#allocation3 + $0x10] sm:$0xff] %vm304_vm2, %v726_v23  ;;  %1451 = vrcp.f32 %v1068_v24 }
 0x30c   : > { %v723_v26 = vpop.xlane.xlu1 %722  ;;  %v1037_v39 = vpop.permute.xlu0 %1036 }
 0x30d   : > { %v727_v27 = vadd.f32 %v723_v26, %v711_v25  ;;  %v1050_v44 = vmul.f32 %v1037_v39, %v1026_v38 }
 0x30e   : > { %v1069_v28 = vld [vmem:[#allocation3 + $0x8] sm:$0xff] }
 0x30f   : > { %732 = vst.msk [vmem:[#allocation3 + $0x18] sm:$0xff] %vm304_vm2, %v727_v27  ;;  %1453 = vrcp.f32 %v1069_v28 }
 0x310   : > { %v1032_v36 = vpop.permute.xlu1 %1031 }
 0x311   : > { %v1049_v37 = vmul.f32 %v1032_v36, %v1025_v35 }
 0x312   : > { %v1070_v29 = vld [vmem:[#allocation3 + $0x10] sm:$0xff] }
 0x313   : > { %1455 = vrcp.f32 %v1070_v29 }
 0x314   : > { %v1042_v43 = vpop.permute.xlu1 %1041 }
 0x315   : > { %v1452_v30 = vpop.eup %1451  ;;  %v1051_v49 = vmul.f32 %v1042_v43, %v1027_v45 }
 0x316   : > { %1082 = vperm.xlu1 %1434, %v1452_v30   ;;  %v1071_v31 = vld [vmem:[#allocation3 + $0x18] sm:$0xff] }
 0x317   : > { %1457 = vrcp.f32 %v1071_v31 }
 0x318   : > { %v1047_v51 = vpop.permute.xlu1 %1046 }
 0x319   : > { %v1454_v32 = vpop.eup %1453  ;;  %v1052_v55 = vmul.f32 %v1047_v51, %v1028_v50 }
 0x31a   : > { %1087 = vperm.xlu0 %1433, %v1454_v32  }
 0x31d   : > { %v1456_v33 = vpop.eup %1455 }
 0x31e   : > { %1092 = vperm.xlu1 %1434, %v1456_v33  }
 0x321   : > { %v1458_v34 = vpop.eup %1457 }
 0x322   : > { %1097 = vperm.xlu0 %1433, %v1458_v34  }
 0x345   : > { %v802_v40 = vpop.f32.mrb[4].mxu0 }
 0x346   : > { %v1053_v41 = vadd.f32 %v1049_v37, %v802_v40  ;;  %v1337_v42 = vpop.f32.mrb[5].mxu0 }
 0x348   : > { %1057 = vst.msk [vmem:[#allocation4] sm:$0xff] %vm313_vm0, %v1053_v41 }
 0x349   : > { %v875_v46 = vpop.f32.mrb[4].mxu1 }
 0x34a   : > { %v1054_v47 = vadd.f32 %v1050_v44, %v875_v46  ;;  %v1342_v48 = vpop.f32.mrb[5].mxu1 }
 0x34c   : > { %1058 = vst.msk [vmem:[#allocation4 + $0x8] sm:$0xff] %vm313_vm0, %v1054_v47 }
 0x34d   : > { %v948_v52 = vpop.f32.mrb[6].mxu0 }
 0x34e   : > { %v1055_v53 = vadd.f32 %v1051_v49, %v948_v52  ;;  %v1347_v54 = vpop.f32.mrb[7].mxu0 }
 0x34f   : > { %v1076_v59 = vld [vmem:[#allocation4] sm:$0xff] }
 0x350   : > { %1059 = vst.msk [vmem:[#allocation4 + $0x10] sm:$0xff] %vm313_vm0, %v1055_v53 }
 0x351   : > { %v1021_v56 = vpop.f32.mrb[6].mxu1 }
 0x352   : > { %v1056_v57 = vadd.f32 %v1052_v55, %v1021_v56  ;;  %v1352_v58 = vpop.f32.mrb[7].mxu1 }
 0x353   : > { %v1077_v62 = vld [vmem:[#allocation4 + $0x8] sm:$0xff] }
 0x354   : > { %1060 = vst.msk [vmem:[#allocation4 + $0x18] sm:$0xff] %vm313_vm0, %v1056_v57 }
 0x357   : > { %v1078_v2 = vld [vmem:[#allocation4 + $0x10] sm:$0xff] }
 0x35b   : > { %v1079_v0 = vld [vmem:[#allocation4 + $0x18] sm:$0xff] }
 0x395   : > { %v1083_v60 = vpop.permute.xlu1 %1082 }
 0x396   : > { %v1100_v61 = vmul.f32 %v1083_v60, %v1076_v59 }
 0x398   : > { %1104 = vst.msk [vmem:[%s295_s24] sm:$0xff] %vm313_vm0, %v1100_v61 }
 0x399   : > { %v1088_v63 = vpop.permute.xlu0 %1087 }
 0x39a   : > { %v1101_v1 = vmul.f32 %v1088_v63, %v1077_v62 }
 0x39c   : > { %1105 = vst.msk [vmem:[%s295_s24 + $0x8] sm:$0xff] %vm313_vm0, %v1101_v1 }
 0x39d   : > { %v1093_v3 = vpop.permute.xlu1 %1092 }
 0x39e   : > { %v1102_v4 = vmul.f32 %v1093_v3, %v1078_v2 }
 0x3a0   : > { %1106 = vst.msk [vmem:[%s295_s24 + $0x10] sm:$0xff] %vm313_vm0, %v1102_v4 }
 0x3a1   : > { %v1098_v5 = vpop.permute.xlu0 %1097 }
 0x3a2   : > { %v1103_v6 = vmul.f32 %v1098_v5, %v1079_v0 }
 0x3a4   : > { %1107 = vst.msk [vmem:[%s295_s24 + $0x18] sm:$0xff] %vm313_vm0, %v1103_v6 }
 0x3a5   : > { %1562 = shalt.err (!%p1559_p13)
}
 0x3a6   : > { %s1563_s28 = scalar_lea.hbm %s2013_s30, 512  ;;  %s1567_s10 = scalar_lea.hbm %s2066_s3, 1024 }
 0x3a7   : > { %p1564_p11 = scmp.ne.s32.totalorder %s2013_s30, %s1563_s28  ;;  %p1568_p7 = scmp.lt.u32.totalorder %s2013_s30, %s2066_s3 }
 0x3a8   : > { %p1569_p4 = scmp.lt.u32.totalorder %s1567_s10, %s1563_s28  ;;  %p1571_p0 = scmp.lt.u32.totalorder %s1563_s28, %s2013_s30 }
 0x3a9   : > { %p1565_p2 = pnand %p1564_p11, %p2095_p10 }
 0x3aa   : > { %p1570_p3 = por %p1569_p4, %p1568_p7 }
 0x3ab   : > { %p1566_p5 = pneg %p1565_p2 }
 0x3ac   : > { %p1572_p8 = por %p1571_p0, %p1570_p3 }
 0x3ae   : > { %p1573_p9 = pnand %p1572_p8, %p1566_p5 }
 0x3b0   : > { %1576 = shalt.err (!%p1573_p9)
}
 0x3b1   : > { %s1647_s11 = smov 128   ;;  %s1648_s19 = smov 8  }
 0x3b2   : > { %1359 = dma.vmem_to_hbm [thread:$0]  (%p2095_p10), %s2007_s16, 512, %s2013_s30, %s1109_s6, %s1647_s11, %s1647_s11, %s1648_s19  }
 0x3b3 PF: > { %s1138_s9 = sand.u32 1, %s1615_s12   ;;  %p2096_p12 = scmp.ne.s32.totalorder %s2083_s27, 0 }
 0x3b4   : > { %p2097_p1 = scmp.ge.s32.totalorder %s1635_s17, 2  ;;  %s1139_s18 = scalar_lea.sflag [#allocation7], %s1138_s9 }
 0x3b6   : > { %p1372_p6 = pnand %p2097_p1, %p2096_p12 }
 0x3b8   : > { %1610 = dma.done.wait (!%p1372_p6), %s1139_s18, 512  }
 0x3b9   : > { %1612 = vsyncadd (!%p1372_p6), %s1139_s18, 4294966784  ;;  %s22_s17 = sadd.s32 1, %s1635_s17   ;;  %s2098_s24 = sld [smem:[#allocation17_spill]] }
 0x3ba   : > { %p19_p13 = scmp.ge.s32.totalorder %s22_s17, 4   ;;  %s2099_s15 = sld [smem:[#allocation15_spill]] }
 0x3bb   : > { %s2100_s16 = sld [smem:[#allocation16_spill]]  ;;  %s2101_s12 = smov %s1619_s13 }
 0x3bc   : > { %s2102_s13 = smov %s1623_s14  ;;  %21 = sbr.rel (!%p19_p13) target bundleno = 10 (0xa), region = 109 }
 0x3bf   : > { %s2103_s14 = smov %s2098_s24 }
 0x3c3   :  { %1144 = vsyncpa [#allocation6], 1 }
 0x3c4   :  { %1146 = vsyncpa [#allocation6 + $0x1], 1 }
 0x3c5   :  { %1147 = vsyncpa [#allocation9], 1 }
 0x3c6   :  { %1149 = vsyncpa [#allocation9 + $0x1], 1 }
 0x3c7   :  { %1150 = vsyncpa [#allocation7], 1 }
 0x3c8   :  { %1152 = vsyncpa [#allocation7 + $0x1], 1 }

</bundles_post_ra>
